<compile_context>
chip_gen: v7x
topology: tpu7x:2x2x1
jax: 0.10.0
libtpu: 0.0.40
codegen_flags: <defaults>
</compile_context>

<pallas_src>
import math
import jax
import jax.numpy as jnp
from jax import lax
from jax.experimental import pallas as pl
from jax.experimental.pallas import tpu as pltpu


def _make_lm_head_kernel(eps):
    inv_sqrt2 = 1.0 / math.sqrt(2.0)
    # Contract the shared H axis of (rows, H) x (out, H) -> (rows, out); no transpose.
    contract_h = (((1,), (1,)), ((), ()))

    def kernel(h_ref, wd_ref, bd_ref, g_ref, b_ref, dw_ref, db_ref,
               out_ref, t_scratch):
        j = pl.program_id(1)   # vocab tile index (innermost grid axis)

        # Dense + gelu + LayerNorm: computed once per row tile (vocab inner axis
        # is "arbitrary"/sequential, so j==0 always runs first for each row tile),
        # cached in bf16 for the whole vocab sweep.
        @pl.when(j == 0)
        def _():
            x = h_ref[...]                                          # (tm, H) f32
            y = lax.dot_general(x, wd_ref[...], contract_h,
                                preferred_element_type=jnp.float32) + bd_ref[...]
            # erf-based gelu (matches torch.erf formulation in the module)
            y = y * 0.5 * (1.0 + lax.erf(y * inv_sqrt2))
            # LayerNorm over last dim (biased variance), f32 math
            mean = jnp.mean(y, axis=-1, keepdims=True)
            var = jnp.mean(jnp.square(y - mean), axis=-1, keepdims=True)
            y = (y - mean) * lax.rsqrt(var + eps)
            y = y * g_ref[...] + b_ref[...]
            t_scratch[...] = y.astype(t_scratch.dtype)              # bf16 cache

        # Vocab projection for this (row tile, vocab tile):
        # bf16 x bf16 on the MXU with f32 accumulation; bias add in f32.
        out_ref[...] = (lax.dot_general(t_scratch[...], dw_ref[...], contract_h,
                                        preferred_element_type=jnp.float32)
                        + db_ref[...])

    return kernel


def bert_lm_prediction_head(hidden_states, params, *, eps=1e-12, tm=256, tv=512):
    """hidden_states: [B, S, H] float32. Returns logits [B, S, V] float32."""
    B, S, H = hidden_states.shape
    V = params["decoder_weight"].shape[0]
    M = B * S

    tm = min(tm, M)
    tv = min(tv, V)
    assert M % tm == 0 and tm % 8 == 0
    assert H % 128 == 0
    assert V % tv == 0 and tv % 128 == 0

    x2d = hidden_states.reshape(M, H).astype(jnp.float32)
    wd = params["dense_weight"].astype(jnp.float32)               # (H, H), out-major
    bd = params["dense_bias"].reshape(1, H).astype(jnp.float32)
    g = params["ln_weight"].reshape(1, H).astype(jnp.float32)
    b = params["ln_bias"].reshape(1, H).astype(jnp.float32)
    dw = params["decoder_weight"].astype(jnp.bfloat16)            # (V, H), bf16 for MXU
    db = params["decoder_bias"].reshape(1, V).astype(jnp.float32)

    kernel = _make_lm_head_kernel(eps)

    cost = pl.CostEstimate(
        flops=2 * M * H * H + 2 * M * V * H,
        transcendentals=M * H,
        bytes_accessed=4 * M * H + 4 * H * H + 2 * V * H + 4 * M * V,
    )

    out = pl.pallas_call(
        kernel,
        out_shape=jax.ShapeDtypeStruct((M, V), jnp.float32),
        grid_spec=pltpu.PrefetchScalarGridSpec(
            num_scalar_prefetch=0,
            grid=(M // tm, V // tv),            # rows outer (parallel), vocab inner
            in_specs=[
                pl.BlockSpec((tm, H), lambda i, j: (i, 0)),   # hidden row tile
                pl.BlockSpec((H, H), lambda i, j: (0, 0)),    # dense weight (out, in)
                pl.BlockSpec((1, H), lambda i, j: (0, 0)),    # dense bias
                pl.BlockSpec((1, H), lambda i, j: (0, 0)),    # LN gamma
                pl.BlockSpec((1, H), lambda i, j: (0, 0)),    # LN beta
                pl.BlockSpec((tv, H), lambda i, j: (j, 0)),   # decoder weight tile (bf16)
                pl.BlockSpec((1, tv), lambda i, j: (0, j)),   # decoder bias tile
            ],
            out_specs=pl.BlockSpec((tm, tv), lambda i, j: (i, j)),
            scratch_shapes=[pltpu.VMEM((tm, H), jnp.bfloat16)],
        ),
        compiler_params=pltpu.CompilerParams(
            dimension_semantics=("parallel", "arbitrary"),
            vmem_limit_bytes=64 * 1024 * 1024),
        cost_estimate=cost,
    )(x2d, wd, bd, g, b, dw, db)

    return out.reshape(B, S, V)


def reference(hidden_states, params, eps=1e-12):
    x = hidden_states
    y = jnp.einsum("bsh,oh->bso", x, params["dense_weight"]) + params["dense_bias"]
    y = y * 0.5 * (1.0 + lax.erf(y / jnp.sqrt(2.0)))
    mean = jnp.mean(y, axis=-1, keepdims=True)
    var = jnp.mean(jnp.square(y - mean), axis=-1, keepdims=True)
    y = (y - mean) / jnp.sqrt(var + eps)
    y = y * params["ln_weight"] + params["ln_bias"]
    return jnp.einsum("bsh,vh->bsv", y, params["decoder_weight"]) + params["decoder_bias"]


if __name__ == "__main__":
    B, S, H, V = 2, 8, 128, 256   # batch, seq, hidden_size, vocab_size
    key = jax.random.PRNGKey(0)
    k_x, k_wd, k_bd, k_dw = jax.random.split(key, 4)

    hidden_states = jax.random.normal(k_x, (B, S, H), dtype=jnp.float32)

    params = {
        "dense_weight": jax.random.normal(k_wd, (H, H), dtype=jnp.float32) * 0.02,
        "dense_bias": jax.random.normal(k_bd, (H,), dtype=jnp.float32) * 0.02,
        "ln_weight": jnp.ones((H,), dtype=jnp.float32),
        "ln_bias": jnp.zeros((H,), dtype=jnp.float32),
        # bert_model_embedding_weights: [vocab_size, hidden_size]
        "decoder_weight": jax.random.normal(k_dw, (V, H), dtype=jnp.float32) * 0.02,
        # nn.Parameter(torch.zeros(vocab_size))
        "decoder_bias": jnp.zeros((V,), dtype=jnp.float32),
    }

    out = bert_lm_prediction_head(hidden_states, params, eps=1e-12)
    jax.block_until_ready(out)

    ref = reference(hidden_states, params, eps=1e-12)
    assert out.shape == (B, S, V)
    # Tolerance accounts for the bf16 inputs to the vocab-projection matmul
    # (f32 accumulation); transform math (dense/gelu/LayerNorm) is full f32.
    assert jnp.allclose(out, ref, atol=3e-2, rtol=3e-2), (
        float(jnp.max(jnp.abs(out - ref))))

    print("KERNEL_OK")
</pallas_src>

<mosaic_0001>
module attributes {stable_mosaic.version = 11 : i64} {
  func.func @kernel(%arg0: i32, %arg1: i32, %arg2: memref<16x128xf32, #tpu.memory_space<vmem>>, %arg3: memref<128x128xf32, #tpu.memory_space<vmem>>, %arg4: memref<1x128xf32, #tpu.memory_space<vmem>>, %arg5: memref<1x128xf32, #tpu.memory_space<vmem>>, %arg6: memref<1x128xf32, #tpu.memory_space<vmem>>, %arg7: memref<256x128xbf16, #tpu.memory_space<vmem>>, %arg8: memref<1x256xf32, #tpu.memory_space<vmem>>, %arg9: memref<16x256xf32, #tpu.memory_space<vmem>>, %arg10: memref<16x128xbf16, #tpu.memory_space<vmem>>) attributes {dimension_semantics = [#tpu.dimension_semantics<parallel>, #tpu.dimension_semantics<arbitrary>], iteration_bounds = array<i64: 1, 1>, scalar_prefetch = 0 : i64, scratch_operands = 1 : i64, tpu.core_type = #tpu.core_type<tc>, window_params = [{transform_indices = @transform_0, window_bounds = array<i64: 16, 128>}, {pipeline_mode = #tpu.pipeline_mode<synchronous>, transform_indices = @transform_1, window_bounds = array<i64: 128, 128>}, {pipeline_mode = #tpu.pipeline_mode<synchronous>, transform_indices = @transform_2, window_bounds = array<i64: 1, 128>}, {pipeline_mode = #tpu.pipeline_mode<synchronous>, transform_indices = @transform_3, window_bounds = array<i64: 1, 128>}, {pipeline_mode = #tpu.pipeline_mode<synchronous>, transform_indices = @transform_4, window_bounds = array<i64: 1, 128>}, {transform_indices = @transform_5, window_bounds = array<i64: 256, 128>}, {transform_indices = @transform_6, window_bounds = array<i64: 1, 256>}, {transform_indices = @transform_7, window_bounds = array<i64: 16, 256>}]} {
    %c0_i32 = arith.constant 0 : i32
    %0 = arith.cmpi eq, %arg1, %c0_i32 : i32
    %1 = arith.extui %0 : i1 to i32
    %c0_i32_0 = arith.constant 0 : i32
    %2 = arith.cmpi ne, %1, %c0_i32_0 : i32
    scf.if %2 {
      %c0_8 = arith.constant 0 : index
      %c0_9 = arith.constant 0 : index
      %10 = vector.load %arg2[%c0_8, %c0_9] : memref<16x128xf32, #tpu.memory_space<vmem>>, vector<16x128xf32>
      %c0_10 = arith.constant 0 : index
      %c0_11 = arith.constant 0 : index
      %11 = vector.load %arg3[%c0_10, %c0_11] : memref<128x128xf32, #tpu.memory_space<vmem>>, vector<128x128xf32>
      %cst_12 = arith.constant dense<0.000000e+00> : vector<16x128xf32>
      %12 = tpu.matmul %10, %11, %cst_12 {dimension_numbers = #tpu.dot_dimension_numbers<[1], [1], [0], [0], [0, 0, 1, 0], [], []>} : vector<16x128xf32>, vector<128x128xf32>, vector<16x128xf32> -> vector<16x128xf32>
      %c0_13 = arith.constant 0 : index
      %c0_14 = arith.constant 0 : index
      %13 = vector.load %arg4[%c0_13, %c0_14] : memref<1x128xf32, #tpu.memory_space<vmem>>, vector<1x128xf32>
      %14 = vector.broadcast %13 : vector<1x128xf32> to vector<16x128xf32>
      %15 = arith.addf %12, %14 : vector<16x128xf32>
      %cst_15 = arith.constant 5.000000e-01 : f32
      %16 = vector.broadcast %cst_15 : f32 to vector<16x128xf32>
      %17 = arith.mulf %15, %16 : vector<16x128xf32>
      %cst_16 = arith.constant 0.707106769 : f32
      %18 = vector.broadcast %cst_16 : f32 to vector<16x128xf32>
      %19 = arith.mulf %15, %18 : vector<16x128xf32>
      %20 = math.erf %19 : vector<16x128xf32>
      %cst_17 = arith.constant 1.000000e+00 : f32
      %21 = vector.broadcast %cst_17 : f32 to vector<16x128xf32>
      %22 = arith.addf %21, %20 : vector<16x128xf32>
      %23 = arith.mulf %17, %22 : vector<16x128xf32>
      %cst_18 = arith.constant dense<0.000000e+00> : vector<16xf32>
      %24 = vector.multi_reduction <add>, %23, %cst_18 [1] : vector<16x128xf32> to vector<16xf32>
      %25 = vector.shape_cast %24 : vector<16xf32> to vector<16x1xf32>
      %cst_19 = arith.constant 1.280000e+02 : f32
      %26 = vector.broadcast %cst_19 : f32 to vector<16x1xf32>
      %27 = arith.divf %25, %26 : vector<16x1xf32>
      %28 = vector.broadcast %27 : vector<16x1xf32> to vector<16x128xf32>
      %29 = arith.subf %23, %28 : vector<16x128xf32>
      %30 = arith.mulf %29, %29 : vector<16x128xf32>
      %cst_20 = arith.constant dense<0.000000e+00> : vector<16xf32>
      %31 = vector.multi_reduction <add>, %30, %cst_20 [1] : vector<16x128xf32> to vector<16xf32>
      %32 = vector.shape_cast %31 : vector<16xf32> to vector<16x1xf32>
      %cst_21 = arith.constant 1.280000e+02 : f32
      %33 = vector.broadcast %cst_21 : f32 to vector<16x1xf32>
      %34 = arith.divf %32, %33 : vector<16x1xf32>
      %35 = vector.broadcast %27 : vector<16x1xf32> to vector<16x128xf32>
      %36 = arith.subf %23, %35 : vector<16x128xf32>
      %cst_22 = arith.constant 9.99999996E-13 : f32
      %37 = vector.broadcast %cst_22 : f32 to vector<16x1xf32>
      %38 = arith.addf %34, %37 : vector<16x1xf32>
      %39 = math.rsqrt %38 : vector<16x1xf32>
      %40 = vector.broadcast %39 : vector<16x1xf32> to vector<16x128xf32>
      %41 = arith.mulf %36, %40 : vector<16x128xf32>
      %c0_23 = arith.constant 0 : index
      %c0_24 = arith.constant 0 : index
      %42 = vector.load %arg5[%c0_23, %c0_24] : memref<1x128xf32, #tpu.memory_space<vmem>>, vector<1x128xf32>
      %43 = vector.broadcast %42 : vector<1x128xf32> to vector<16x128xf32>
      %44 = arith.mulf %41, %43 : vector<16x128xf32>
      %c0_25 = arith.constant 0 : index
      %c0_26 = arith.constant 0 : index
      %45 = vector.load %arg6[%c0_25, %c0_26] : memref<1x128xf32, #tpu.memory_space<vmem>>, vector<1x128xf32>
      %46 = vector.broadcast %45 : vector<1x128xf32> to vector<16x128xf32>
      %47 = arith.addf %44, %46 : vector<16x128xf32>
      %48 = arith.truncf %47 : vector<16x128xf32> to vector<16x128xbf16>
      %c0_27 = arith.constant 0 : index
      %c0_28 = arith.constant 0 : index
      %49 = vector.load %arg10[%c0_27, %c0_28] : memref<16x128xbf16, #tpu.memory_space<vmem>>, vector<16x128xbf16>
      tpu.vector_store %arg10[%c0_27, %c0_28], %48 {strides = array<i32>} : memref<16x128xbf16, #tpu.memory_space<vmem>>, vector<16x128xbf16>,
    } else {
    }
    %c0 = arith.constant 0 : index
    %c0_1 = arith.constant 0 : index
    %3 = vector.load %arg10[%c0, %c0_1] : memref<16x128xbf16, #tpu.memory_space<vmem>>, vector<16x128xbf16>
    %c0_2 = arith.constant 0 : index
    %c0_3 = arith.constant 0 : index
    %4 = vector.load %arg7[%c0_2, %c0_3] : memref<256x128xbf16, #tpu.memory_space<vmem>>, vector<256x128xbf16>
    %cst = arith.constant dense<0.000000e+00> : vector<16x256xf32>
    %5 = tpu.matmul %3, %4, %cst {dimension_numbers = #tpu.dot_dimension_numbers<[1], [1], [0], [0], [0, 0, 1, 0], [], []>} : vector<16x128xbf16>, vector<256x128xbf16>, vector<16x256xf32> -> vector<16x256xf32>
    %c0_4 = arith.constant 0 : index
    %c0_5 = arith.constant 0 : index
    %6 = vector.load %arg8[%c0_4, %c0_5] : memref<1x256xf32, #tpu.memory_space<vmem>>, vector<1x256xf32>
    %7 = vector.broadcast %6 : vector<1x256xf32> to vector<16x256xf32>
    %8 = arith.addf %5, %7 : vector<16x256xf32>
    %c0_6 = arith.constant 0 : index
    %c0_7 = arith.constant 0 : index
    %9 = vector.load %arg9[%c0_6, %c0_7] : memref<16x256xf32, #tpu.memory_space<vmem>>, vector<16x256xf32>
    tpu.vector_store %arg9[%c0_6, %c0_7], %8 {strides = array<i32>} : memref<16x256xf32, #tpu.memory_space<vmem>>, vector<16x256xf32>,
    return
  }
  func.func @transform_0(%arg0: i32, %arg1: i32) -> (i32, i32) {
    %c0_i32 = arith.constant 0 : i32
    %c0_i32_0 = arith.constant 0 : i32
    return %arg0, %c0_i32 : i32, i32
  }
  func.func @transform_1(%arg0: i32, %arg1: i32) -> (i32, i32) {
    %c0_i32 = arith.constant 0 : i32
    %c0_i32_0 = arith.constant 0 : i32
    %c0_i32_1 = arith.constant 0 : i32
    return %c0_i32, %c0_i32_0 : i32, i32
  }
  func.func @transform_2(%arg0: i32, %arg1: i32) -> (i32, i32) {
    %c0_i32 = arith.constant 0 : i32
    %c0_i32_0 = arith.constant 0 : i32
    %c0_i32_1 = arith.constant 0 : i32
    return %c0_i32, %c0_i32_0 : i32, i32
  }
  func.func @transform_3(%arg0: i32, %arg1: i32) -> (i32, i32) {
    %c0_i32 = arith.constant 0 : i32
    %c0_i32_0 = arith.constant 0 : i32
    %c0_i32_1 = arith.constant 0 : i32
    return %c0_i32, %c0_i32_0 : i32, i32
  }
  func.func @transform_4(%arg0: i32, %arg1: i32) -> (i32, i32) {
    %c0_i32 = arith.constant 0 : i32
    %c0_i32_0 = arith.constant 0 : i32
    %c0_i32_1 = arith.constant 0 : i32
    return %c0_i32, %c0_i32_0 : i32, i32
  }
  func.func @transform_5(%arg0: i32, %arg1: i32) -> (i32, i32) {
    %c0_i32 = arith.constant 0 : i32
    %c0_i32_0 = arith.constant 0 : i32
    return %arg1, %c0_i32 : i32, i32
  }
  func.func @transform_6(%arg0: i32, %arg1: i32) -> (i32, i32) {
    %c0_i32 = arith.constant 0 : i32
    %c0_i32_0 = arith.constant 0 : i32
    return %c0_i32, %arg1 : i32, i32
  }
  func.func @transform_7(%arg0: i32, %arg1: i32) -> (i32, i32) {
    %c0_i32 = arith.constant 0 : i32
    return %arg0, %arg1 : i32, i32
  }
}

</mosaic_0001>

<bundles_post_ra>
// kernel: tpu_custom_call.1
= control target key start
LH: loop header
LB: loop body
LE: loop exit
PB: predicated region body
PF: predicated region fallthrough
CT: control target
= control target key end

     0   :  { %12 = vsyncpa [#allocation4], 0  ;;  %s990_s0 = inlined_call_operand.hbm [shape: f32[16,128], index: 0, kind: input, shape index: {}]   ;;  %s991_s1 = inlined_call_operand.hbm [shape: f32[128,128], index: 1, kind: input, shape index: {}]   ;;  %s992_s2 = inlined_call_operand.hbm [shape: f32[1,128], index: 2, kind: input, shape index: {}]   ;;  %s993_s3 = inlined_call_operand.hbm [shape: f32[1,128], index: 3, kind: input, shape index: {}]   ;;  %s994_s4 = inlined_call_operand.hbm [shape: f32[1,128], index: 4, kind: input, shape index: {}]   ;;  %s995_s5 = inlined_call_operand.hbm [shape: bf16[256,128], index: 5, kind: input, shape index: {}]   ;;  %s996_s6 = inlined_call_operand.hbm [shape: f32[1,256], index: 6, kind: input, shape index: {}]   ;;  %s997_s7 = inlined_call_operand.hbm [shape: f32[16,256], index: 7, kind: output, shape index: {}]  }
   0x1   :  { %13 = vsyncpa [#allocation7], 0 }
   0x2   :  { %14 = vsyncpa [#allocation10], 0 }
   0x3   :  { %15 = vsyncpa [#allocation13], 0 }
   0x4   :  { %16 = vsyncpa [#allocation5], 0  ;;  %s826_s24 = smov [#allocation6]   ;;  %s827_s26 = smov [#allocation9]  }
   0x5   :  { %s34_s25 = sshll.u32 %s826_s24, 4  ;;  %s57_s27 = sshll.u32 %s827_s26, 4  ;;  %s35_s25 = int_to_ptr.vmem [resolvable:$true] %s34_s25  ;;  %s880_s27 = int_to_ptr.vmem [resolvable:$true] %s57_s27 }
   0x6   :  { %s640_s30 = scalar_lea.hbm %s991_s1, 2048 }
   0x7   :  { %p641_p0 = scmp.ne.s32.totalorder %s991_s1, %s640_s30  ;;  %p644_p1 = scmp.lt.u32.totalorder %s640_s30, %s991_s1 }
   0x9   :  { %p646_p2 = pnand %p644_p1, %p641_p0 }
   0xb   :  { %649 = shalt.err (!%p646_p2)
}
   0xc   :  { %s650_s12 = scalar_lea.vmem %s35_s25, 2048  ;;  %p655_p4 = scmp.lt.s32.totalorder %s35_s25, %s35_s25 }
   0xd   :  { %p651_p3 = scmp.ne.s32.totalorder %s35_s25, %s650_s12  ;;  %p656_p5 = scmp.lt.s32.totalorder %s650_s12, %s650_s12 }
   0xf   :  { %p657_p6 = por %p656_p5, %p655_p4 }
  0x11   :  { %p658_p7 = pnand %p657_p6, %p651_p3 }
  0x13   :  { %661 = shalt.err (!%p658_p7)
}
  0x14   :  { %s828_s13 = smov 128   ;;  %s829_s14 = smov 8  }
  0x15   :  { %40 = dma.hbm_to_vmem [thread:$0]  %s991_s1, 2048, %s35_s25, [#allocation7], %s828_s13, %s828_s13, %s829_s14  }
  0x16   :  { %s662_s19 = scalar_lea.hbm %s993_s3, 16 }
  0x17   :  { %p663_p8 = scmp.ne.s32.totalorder %s993_s3, %s662_s19  ;;  %p666_p9 = scmp.lt.u32.totalorder %s662_s19, %s993_s3 }
  0x19   :  { %p668_p10 = pnand %p666_p9, %p663_p8 }
  0x1b   :  { %671 = shalt.err (!%p668_p10)
}
  0x1c   :  { %s672_s24 = scalar_lea.vmem %s880_s27, 16  ;;  %s676_s1 = scalar_lea.vmem %s880_s27, 32 }
  0x1d   :  { %p673_p11 = scmp.ne.s32.totalorder %s880_s27, %s672_s24  ;;  %p677_p12 = scmp.lt.s32.totalorder %s880_s27, %s880_s27 }
  0x1e   :  { %p678_p13 = scmp.lt.s32.totalorder %s676_s1, %s672_s24 }
  0x20   :  { %p679_p0 = por %p678_p13, %p677_p12 }
  0x22   :  { %p680_p1 = pnand %p679_p0, %p673_p11 }
  0x24   :  { %683 = shalt.err (!%p680_p1)
}
  0x25   :  { %60 = dma.hbm_to_vmem [thread:$0]  %s993_s3, 16, %s880_s27, [#allocation10]  }
  0x26   :  { %s830_s28 = smov [#allocation12]   ;;  %s684_s9 = scalar_lea.hbm %s995_s5, 2048 }
  0x27   :  { %s76_s29 = sshll.u32 %s830_s28, 4  ;;  %p685_p2 = scmp.ne.s32.totalorder %s995_s5, %s684_s9  ;;  %s77_s29 = int_to_ptr.vmem [resolvable:$true] %s76_s29 }
  0x28   :  { %p688_p3 = scmp.lt.u32.totalorder %s684_s9, %s995_s5 }
  0x2a   :  { %p690_p4 = pnand %p688_p3, %p685_p2 }
  0x2c   :  { %693 = shalt.err (!%p690_p4)
}
  0x2d   :  { %s694_s16 = scalar_lea.vmem %s77_s29, 2048  ;;  %p699_p6 = scmp.lt.s32.totalorder %s77_s29, %s77_s29 }
  0x2e   :  { %p695_p5 = scmp.ne.s32.totalorder %s77_s29, %s694_s16  ;;  %p700_p7 = scmp.lt.s32.totalorder %s694_s16, %s694_s16 }
  0x30   :  { %p701_p8 = por %p700_p7, %p699_p6 }
  0x32   :  { %p702_p9 = pnand %p701_p8, %p695_p5 }
  0x34   :  { %705 = shalt.err (!%p702_p9)
}
  0x35   :  { %s831_s3 = smov 64   ;;  %s832_s27 = smov 4  }
  0x36   :  { %82 = dma.hbm_to_vmem [thread:$0]  %s995_s5, 2048, %s77_s29, [#allocation13], %s831_s3, %s831_s3, %s832_s27  }
  0x37   :  { %s833_s19 = smov [#allocation3]   ;;  %s834_s21 = smov [#allocation8]  }
  0x38   :  { %s22_s20 = sshll.u32 %s833_s19, 4  ;;  %s47_s22 = sshll.u32 %s834_s21, 4  ;;  %s23_s20 = int_to_ptr.vmem [resolvable:$true] %s22_s20  ;;  %s48_s22 = int_to_ptr.vmem [resolvable:$true] %s47_s22 }
  0x39   :  { %s706_s1 = scalar_lea.hbm %s990_s0, 256 }
  0x3a   :  { %p707_p10 = scmp.ne.s32.totalorder %s990_s0, %s706_s1  ;;  %p710_p11 = scmp.lt.u32.totalorder %s706_s1, %s990_s0 }
  0x3c   :  { %p712_p12 = pnand %p710_p11, %p707_p10 }
  0x3e   :  { %715 = shalt.err (!%p712_p12)
}
  0x3f   :  { %s716_s5 = scalar_lea.vmem %s23_s20, 256  ;;  %p721_p0 = scmp.lt.s32.totalorder %s23_s20, %s23_s20 }
  0x40   :  { %p717_p13 = scmp.ne.s32.totalorder %s23_s20, %s716_s5  ;;  %p722_p1 = scmp.lt.s32.totalorder %s716_s5, %s716_s5 }
  0x42   :  { %p723_p2 = por %p722_p1, %p721_p0 }
  0x44   :  { %p724_p3 = pnand %p723_p2, %p717_p13 }
  0x46   :  { %727 = shalt.err (!%p724_p3)
}
  0x47   :  { %28 = dma.hbm_to_vmem [thread:$0]  %s990_s0, 256, %s23_s20, [#allocation4], %s828_s13, %s828_s13, %s829_s14  }
  0x48   :  { %s728_s11 = scalar_lea.hbm %s992_s2, 16 }
  0x49   :  { %p729_p4 = scmp.ne.s32.totalorder %s992_s2, %s728_s11  ;;  %p732_p5 = scmp.lt.u32.totalorder %s728_s11, %s992_s2 }
  0x4b   :  { %p734_p6 = pnand %p732_p5, %p729_p4 }
  0x4d   :  { %737 = shalt.err (!%p734_p6)
}
  0x4e   :  { %s738_s27 = scalar_lea.vmem %s48_s22, 16  ;;  %s742_s17 = scalar_lea.vmem %s48_s22, 32 }
  0x4f   :  { %p739_p7 = scmp.ne.s32.totalorder %s48_s22, %s738_s27  ;;  %p743_p8 = scmp.lt.s32.totalorder %s48_s22, %s48_s22 }
  0x50   :  { %p744_p9 = scmp.lt.s32.totalorder %s742_s17, %s738_s27 }
  0x52   :  { %p745_p10 = por %p744_p9, %p743_p8 }
  0x54   :  { %p746_p11 = pnand %p745_p10, %p739_p7 }
  0x56   :  { %749 = shalt.err (!%p746_p11)
}
  0x57   :  { %50 = dma.hbm_to_vmem [thread:$0]  %s992_s2, 16, %s48_s22, [#allocation7]  }
  0x58   :  { %s835_s14 = smov [#allocation11]   ;;  %s836_s19 = smov [#allocation14]  }
  0x59   :  { %s67_s18 = sshll.u32 %s835_s14, 4  ;;  %s89_s20 = sshll.u32 %s836_s19, 4  ;;  %s68_s18 = int_to_ptr.vmem [resolvable:$true] %s67_s18  ;;  %s90_s20 = int_to_ptr.vmem [resolvable:$true] %s89_s20 }
  0x5a   :  { %s750_s24 = scalar_lea.hbm %s994_s4, 16 }
  0x5b   :  { %p751_p12 = scmp.ne.s32.totalorder %s994_s4, %s750_s24  ;;  %p754_p13 = scmp.lt.u32.totalorder %s750_s24, %s994_s4 }
  0x5d   :  { %p756_p0 = pnand %p754_p13, %p751_p12 }
  0x5f   :  { %759 = shalt.err (!%p756_p0)
}
  0x60   :  { %s760_s2 = scalar_lea.vmem %s68_s18, 16  ;;  %s764_s22 = scalar_lea.vmem %s68_s18, 32 }
  0x61   :  { %p761_p1 = scmp.ne.s32.totalorder %s68_s18, %s760_s2  ;;  %p765_p2 = scmp.lt.s32.totalorder %s68_s18, %s68_s18 }
  0x62   :  { %p766_p3 = scmp.lt.s32.totalorder %s764_s22, %s760_s2 }
  0x64   :  { %p767_p4 = por %p766_p3, %p765_p2 }
  0x66   :  { %p768_p5 = pnand %p767_p4, %p761_p1 }
  0x68   :  { %771 = shalt.err (!%p768_p5)
}
  0x69   :  { %70 = dma.hbm_to_vmem [thread:$0]  %s994_s4, 16, %s68_s18, [#allocation10]  }
  0x6a   :  { %s772_s9 = scalar_lea.hbm %s996_s6, 32 }
  0x6b   :  { %p773_p6 = scmp.ne.s32.totalorder %s996_s6, %s772_s9  ;;  %p776_p7 = scmp.lt.u32.totalorder %s772_s9, %s996_s6 }
  0x6d   :  { %p778_p8 = pnand %p776_p7, %p773_p6 }
  0x6f   :  { %781 = shalt.err (!%p778_p8)
}
  0x70   :  { %s782_s16 = scalar_lea.vmem %s90_s20, 32  ;;  %p787_p10 = scmp.lt.s32.totalorder %s90_s20, %s90_s20 }
  0x71   :  { %p783_p9 = scmp.ne.s32.totalorder %s90_s20, %s782_s16  ;;  %p788_p11 = scmp.lt.s32.totalorder %s782_s16, %s782_s16 }
  0x73   :  { %p789_p12 = por %p788_p11, %p787_p10 }
  0x75   :  { %p790_p13 = pnand %p789_p12, %p783_p9 }
  0x77   :  { %793 = shalt.err (!%p790_p13)
}
  0x78   :  { %92 = dma.hbm_to_vmem [thread:$0]  %s996_s6, 32, %s90_s20, [#allocation13]  }
  0x79   :  { %816 = dma.done.wait [#allocation4], 256  }
  0x7a   :  { %817 = vsyncadd [#allocation4], 4294967040 }
  0x7b   :  { %818 = dma.done.wait [#allocation7], 2064  }
  0x7c   :  { %819 = vsyncadd [#allocation7], 4294965232 }
  0x7d   :  { %820 = dma.done.wait [#allocation10], 32  }
  0x7e   :  { %821 = vsyncadd [#allocation10], 4294967264 }
  0x7f   :  { %822 = dma.done.wait [#allocation13], 2080  }
  0x80   :  { %823 = vsyncadd [#allocation13], 4294965216  ;;  %v121_v0 = vld [vmem:[#allocation6] sm:$0xff]  ;;  %v122_v1 = vld [vmem:[#allocation6 + $0x8] sm:$0xff]  ;;  %s837_s6 = smov [#allocation15]  }
  0x81   :  { %v123_v2 = vld [vmem:[#allocation6 + $0x10] sm:$0xff]  ;;  %v570_v3 = vpack.c.bf16 %v122_v1, %v121_v0  ;;  %v124_v4 = vld [vmem:[#allocation6 + $0x18] sm:$0xff]  ;;  %v125_v6 = vld [vmem:[#allocation6 + $0x20] sm:$0xff]  ;;  %s465_s27 = sshll.u32 %s837_s6, 4  ;;  %s466_s27 = int_to_ptr.vmem [resolvable:$true] %s465_s27 }
  0x82   :  { %v574_v5 = vpack.c.bf16 %v124_v4, %v123_v2  ;;  %v126_v7 = vld [vmem:[#allocation6 + $0x28] sm:$0xff]  ;;  %v119_v8 = vld [vmem:[#allocation3] sm:$0xff]  ;;  %v128_v11 = vld [vmem:[#allocation6 + $0x38] sm:$0xff]  ;;  %s794_s17 = scalar_lea.vmem %s466_s27, 512  ;;  %p799_p1 = scmp.lt.s32.totalorder %s466_s27, %s466_s27 }
  0x83   :  { %571 = vmatprep.subr.bf16.mxu0 %v570_v3  ;;  %567 = vmatprep.mubr.f32.mxu0 %v119_v8  ;;  %v578_v9 = vpack.c.bf16 %v126_v7, %v125_v6  ;;  %v127_v10 = vld [vmem:[#allocation6 + $0x30] sm:$0xff]  ;;  %v129_v13 = vld [vmem:[#allocation6 + $0x40] sm:$0xff]  ;;  %v130_v14 = vld [vmem:[#allocation6 + $0x48] sm:$0xff]  ;;  %p795_p0 = scmp.ne.s32.totalorder %s466_s27, %s794_s17  ;;  %p800_p2 = scmp.lt.s32.totalorder %s794_s17, %s794_s17 }
  0x84   :  { %573 = vmatpush3.bf16.xpose.msra.mxu0 %v570_v3  ;;  %v582_v12 = vpack.c.bf16 %v128_v11, %v127_v10  ;;  %v586_v15 = vpack.c.bf16 %v130_v14, %v129_v13  ;;  %v131_v16 = vld [vmem:[#allocation6 + $0x50] sm:$0xff]  ;;  %v132_v17 = vld [vmem:[#allocation6 + $0x58] sm:$0xff]  ;;  %v133_v19 = vld [vmem:[#allocation6 + $0x60] sm:$0xff] }
  0x85   :  { %575 = vmatprep.subr.bf16.mxu0 %v574_v5  ;;  %v590_v18 = vpack.c.bf16 %v132_v17, %v131_v16  ;;  %v134_v20 = vld [vmem:[#allocation6 + $0x68] sm:$0xff]  ;;  %v135_v22 = vld [vmem:[#allocation6 + $0x70] sm:$0xff]  ;;  %v136_v23 = vld [vmem:[#allocation6 + $0x78] sm:$0xff]  ;;  %p801_p3 = por %p800_p2, %p799_p1 }
  0x86   :  { %v594_v21 = vpack.c.bf16 %v134_v20, %v133_v19  ;;  %v598_v24 = vpack.c.bf16 %v136_v23, %v135_v22  ;;  %v120_v25 = vld [vmem:[#allocation3 + $0x8] sm:$0xff]  ;;  %v480_v26 = vld [vmem:[#allocation8] ss:$0 sm:$0xff]  ;;  %v616_v41 = vld [vmem:[#allocation12 + $0x40] sm:$0xff]  }
  0x87   :  { %v617_v42 = vld [vmem:[#allocation12] sm:$0xff]   ;;  %v618_v43 = vld [vmem:[#allocation12 + $0x48] sm:$0xff]   ;;  %517 = vmatprep.subr.bf16.mxu1 %v616_v41  ;;  %v620_v45 = vld [vmem:[#allocation12 + $0x50] sm:$0xff]   ;;  %p802_p4 = pnand %p801_p3, %p795_p0 }
  0x88   :  { %518 = vmatpush3.bf16.xpose.msra.mxu1 %v617_v42  ;;  %v619_v44 = vld [vmem:[#allocation12 + $0x8] sm:$0xff]   ;;  %v621_v46 = vld [vmem:[#allocation12 + $0x10] sm:$0xff]   ;;  %v622_v47 = vld [vmem:[#allocation12 + $0x58] sm:$0xff]  }
  0x89   :  { %519 = vmatprep.subr.bf16.mxu1 %v618_v43  ;;  %v623_v48 = vld [vmem:[#allocation12 + $0x18] sm:$0xff]   ;;  %v624_v49 = vld [vmem:[#allocation12 + $0x60] sm:$0xff]   ;;  %v626_v59 = vld [vmem:[#allocation12 + $0x68] sm:$0xff]  }
  0x8a   :  { %v625_v50 = vld [vmem:[#allocation12 + $0x20] sm:$0xff]   ;;  %v627_v60 = vld [vmem:[#allocation12 + $0x28] sm:$0xff]   ;;  %v628_v61 = vld [vmem:[#allocation12 + $0x70] sm:$0xff]  }
  0x8b   :  { %v629_v62 = vld [vmem:[#allocation12 + $0x30] sm:$0xff]   ;;  %v630_v63 = vld [vmem:[#allocation12 + $0x78] sm:$0xff]  }
  0x8c   :  { %577 = vmatpush3.bf16.xpose.msra.mxu0 %v574_v5  ;;  %v631_v0 = vld [vmem:[#allocation12 + $0x38] sm:$0xff]  }
  0x8d   :  { %579 = vmatprep.subr.bf16.mxu0 %v578_v9  ;;  %v482_v13 = vld [vmem:[#allocation11] ss:$0 sm:$0xff] }
  0x90   :  { %520 = vmatpush3.bf16.xpose.msra.mxu1 %v619_v44 }
  0x91   :  { %521 = vmatprep.subr.bf16.mxu1 %v620_v45 }
  0x94   :  { %581 = vmatpush3.bf16.xpose.msra.mxu0 %v578_v9  ;;  %v481_v9 = vld [vmem:[#allocation9] ss:$0 sm:$0xff] }
  0x95   :  { %583 = vmatprep.subr.bf16.mxu0 %v582_v12 }
  0x98   :  { %522 = vmatpush3.bf16.xpose.msra.mxu1 %v621_v46 }
  0x99   :  { %523 = vmatprep.subr.bf16.mxu1 %v622_v47 }
  0x9c   :  { %585 = vmatpush3.bf16.xpose.msra.mxu0 %v582_v12 }
  0x9d   :  { %587 = vmatprep.subr.bf16.mxu0 %v586_v15 }
  0xa0   :  { %524 = vmatpush3.bf16.xpose.msra.mxu1 %v623_v48 }
  0xa1   :  { %525 = vmatprep.subr.bf16.mxu1 %v624_v49 }
  0xa4   :  { %589 = vmatpush3.bf16.xpose.msra.mxu0 %v586_v15 }
  0xa5   :  { %591 = vmatprep.subr.bf16.mxu0 %v590_v18 }
  0xa8   :  { %526 = vmatpush3.bf16.xpose.msra.mxu1 %v625_v50 }
  0xa9   :  { %527 = vmatprep.subr.bf16.mxu1 %v626_v59 }
  0xac   :  { %593 = vmatpush3.bf16.xpose.msra.mxu0 %v590_v18  ;;  %v307_v18 = vlaneseq }
  0xad   :  { %595 = vmatprep.subr.bf16.mxu0 %v594_v21 }
  0xae   :  { %v308_v19 = vshrl.u32 %v307_v18, 7 }
  0xb0   :  { %528 = vmatpush3.bf16.xpose.msra.mxu1 %v627_v60  ;;  %v309_v20 = vsub.s32 0, %v308_v19  ;;  %v313_v22 = vsub.s32 1, %v308_v19 }
  0xb1   :  { %529 = vmatprep.subr.bf16.mxu1 %v628_v61 }
  0xb4   :  { %597 = vmatpush3.bf16.xpose.msra.mxu0 %v594_v21  ;;  %v305_v21 = vld [vmem:[#allocation14] sm:$0x3] }
  0xb5   :  { %599 = vmatprep.subr.bf16.mxu0 %v598_v24  ;;  %v310_v23 = vrot.slane %v305_v21, %v309_v20 }
  0xb8   :  { %530 = vmatpush3.bf16.xpose.msra.mxu1 %v629_v62 }
  0xb9   :  { %531 = vmatprep.subr.bf16.mxu1 %v630_v63 }
  0xbc   :  { %601 = vmatpush3.bf16.xpose.msra.mxu0 %v598_v24  ;;  %v314_v24 = vrot.slane %v305_v21, %v313_v22 }
  0xc0   :  { %532 = vmatpush3.bf16.xpose.msra.mxu1 %v631_v0 }
  0xc3   :  { %568 = vmatmul.mubr.f32.vlgmr.msra.gmra.mrb[0].mxu0 %v120_v25 }
 0x196   :  { %v569_v27 = vpop.f32.mrb[0].mxu0 }
 0x197   :  { %v216_v28 = vadd.f32 %v569_v27, %v480_v26  ;;  %v210_v29 = vpop.f32.mrb[1].mxu0 }
 0x198   :  { %v211_v30 = vadd.f32 %v480_v26, %v210_v29 }
 0x199   :  { %v222_v31 = vmul.f32 0.70710677, %v216_v28  ;;  %v220_v39 = vmul.f32 0.5, %v216_v28 }
 0x19a   :  { %v221_v32 = vmul.f32 0.70710677, %v211_v30  ;;  %v219_v35 = vmul.f32 0.5, %v211_v30 }
 0x19b   :  { %632 = verf.f32 %v222_v31 }
 0x19c   :  { %634 = verf.f32 %v221_v32 }
 0x1a5   :  { %v633_v33 = vpop.eup %632 }
 0x1a6   :  { %v635_v34 = vpop.eup %634  ;;  %v226_v38 = vadd.f32 1.0, %v633_v33 }
 0x1a7   :  { %v225_v36 = vadd.f32 1.0, %v635_v34 }
 0x1a8   :  { %v228_v40 = vmul.f32 %v226_v38, %v220_v39 }
 0x1a9   :  { %v227_v37 = vmul.f32 %v225_v36, %v219_v35 }
 0x1ab   :  { %229 = vadd.xlane.f32.xlu0 %v227_v37 }
 0x1af   :  { %231 = vadd.xlane.f32.xlu0 %v228_v40 }
 0x238   :  { %v230_v51 = vpop.xlane.xlu0 %229 }
 0x239   :  { %v234_v52 = vmul.f32 0.0078125, %v230_v51 }
 0x23b   :  { %v236_v53 = vsub.f32 %v227_v37, %v234_v52 }
 0x23c   :  { %v232_v54 = vpop.xlane.xlu0 %231 }
 0x23d   :  { %v235_v55 = vmul.f32 0.0078125, %v232_v54  ;;  %v238_v56 = vmul.f32 %v236_v53, %v236_v53 }
 0x23f   :  { %v237_v57 = vsub.f32 %v228_v40, %v235_v55  ;;  %240 = vadd.xlane.f32.xlu1 %v238_v56 }
 0x241   :  { %v239_v58 = vmul.f32 %v237_v57, %v237_v57 }
 0x243   :  { %242 = vadd.xlane.f32.xlu1 %v239_v58 }
 0x2cc   :  { %v241_v1 = vpop.xlane.xlu1 %240 }
 0x2cd   :  { %v244_v2 = vmul.f32 0.0078125, %v241_v1 }
 0x2cf   :  { %v246_v3 = vadd.f32 1e-12, %v244_v2 }
 0x2d0   :  { %v243_v4 = vpop.xlane.xlu1 %242 }
 0x2d1   :  { %636 = vrsqrt.f32 %v246_v3  ;;  %v245_v5 = vmul.f32 0.0078125, %v243_v4 }
 0x2d3   :  { %v247_v6 = vadd.f32 1e-12, %v245_v5 }
 0x2d5   :  { %638 = vrsqrt.f32 %v247_v6 }
 0x2db   :  { %v637_v7 = vpop.eup %636 }
 0x2dc   :  { %v250_v8 = vmul.f32 %v637_v7, %v236_v53 }
 0x2de   :  { %v259_v12 = vmul.f32 %v481_v9, %v250_v8 }
 0x2df   :  { %v639_v10 = vpop.eup %638 }
 0x2e0   :  { %v251_v11 = vmul.f32 %v639_v10, %v237_v57  ;;  %v268_v15 = vadd.f32 %v482_v13, %v259_v12 }
 0x2e2   :  { %v260_v14 = vmul.f32 %v481_v9, %v251_v11 }
 0x2e4   :  { %v269_v16 = vadd.f32 %v482_v13, %v260_v14 }
 0x2e6   :  { %v270_v17 = vpack.c.bf16 %v269_v16, %v268_v15 }
 0x2e8   :  { %533 = vmatprep.mubr.bf16.mxu1 %v270_v17 }
 0x2e9   :  { %534 = vmatmul.mubr.bf16.vlgmr.msra.gmra.mrb[0].mxu1 %v270_v17 }
 0x3bc   :  { %v447_v25 = vpop.f32.mrb[0].mxu1 }
 0x3bd   :  { %v448_v26 = vadd.f32 %v447_v25, %v310_v23  ;;  %v449_v27 = vpop.f32.mrb[1].mxu1 }
 0x3be   :  { %v450_v28 = vadd.f32 %v449_v27, %v314_v24  ;;  %v451_v29 = vpop.f32.mrb[2].mxu1 }
 0x3bf   :  { %456 = vst [vmem:[#allocation15] sm:$0xff] %v448_v26  ;;  %v452_v30 = vadd.f32 %v451_v29, %v310_v23  ;;  %v453_v31 = vpop.f32.mrb[3].mxu1 }
 0x3c0   :  { %457 = vst [vmem:[#allocation15 + $0x8] sm:$0xff] %v450_v28  ;;  %v454_v32 = vadd.f32 %v453_v31, %v314_v24 }
 0x3c1   :  { %458 = vst [vmem:[#allocation15 + $0x10] sm:$0xff] %v452_v30 }
 0x3c2   :  { %459 = vst [vmem:[#allocation15 + $0x18] sm:$0xff] %v454_v32 }
 0x3c3   :  { %805 = shalt.err (!%p802_p4)
}
 0x3c4   :  { %s806_s14 = scalar_lea.hbm %s997_s7, 512 }
 0x3c5   :  { %p807_p5 = scmp.ne.s32.totalorder %s997_s7, %s806_s14  ;;  %p810_p6 = scmp.lt.u32.totalorder %s806_s14, %s997_s7 }
 0x3c7   :  { %p812_p7 = pnand %p810_p6, %p807_p5 }
 0x3c9   :  { %815 = shalt.err (!%p812_p7)
}
 0x3ca   :  { %s838_s23 = smov 256   ;;  %s839_s24 = smov 16  }
 0x3cb   :  { %471 = dma.vmem_to_hbm [thread:$0]  %s466_s27, 512, %s997_s7, [#allocation5], %s838_s23, %s838_s23, %s839_s24  }
 0x3cc   :  { %824 = dma.done.wait [#allocation5], 512  }
 0x3cd   :  { %825 = vsyncadd [#allocation5], 4294966784 }
 0x3ce   :  { %475 = vsyncpa [#allocation4], 1 }
 0x3cf   :  { %476 = vsyncpa [#allocation7], 1 }
 0x3d0   :  { %477 = vsyncpa [#allocation10], 1 }
 0x3d1   :  { %478 = vsyncpa [#allocation13], 1 }
 0x3d2   :  { %479 = vsyncpa [#allocation5], 1 }

</bundles_post_ra>
